<compile_context>
chip_gen: v5e
topology: v5e:2x2
jax: 0.10.0
libtpu: 0.0.40
codegen_flags: <defaults>
</compile_context>

<pallas_src>
import functools

import jax
import jax.numpy as jnp
from jax.experimental import pallas as pl
from jax.experimental.pallas import tpu as pltpu

_LANE = 128


def _round_up(x, mult):
    return ((x + mult - 1) // mult) * mult


def _round_down(x, mult):
    return (x // mult) * mult


def _linear_kernel(x_ref, w_ref, b_ref, o_ref):
    # x_ref: (TM, d_model), w_ref: (d_model, n_cls_pad), b_ref: (1, n_cls_pad) f32
    acc = jnp.dot(x_ref[...], w_ref[...], preferred_element_type=jnp.float32)
    acc = acc + b_ref[...]                     # bias already f32, broadcasts over rows
    o_ref[...] = acc.astype(o_ref.dtype)


def prepare_classification_head_params(weight, bias, param_dtype=None):
    """One-time parameter prep (do NOT call per forward step).

    weight: (n_cls, d_model) PyTorch convention
    bias:   (n_cls,)
    param_dtype: dtype to store the weight in (use the activation dtype so the
                 matmul does not silently promote / double weight DMA bytes).
    Returns (w_t_pad, b_pad): (d_model, n_cls_pad) weight and (1, n_cls_pad)
    f32 bias, with n_cls_pad = round_up(n_cls, 128) and zero padding.
    """
    n_cls, d_model = weight.shape
    if param_dtype is None:
        param_dtype = weight.dtype
    n_cls_pad = _round_up(n_cls, _LANE)
    w_t_pad = jnp.zeros((d_model, n_cls_pad), dtype=param_dtype)
    w_t_pad = w_t_pad.at[:, :n_cls].set(weight.T.astype(param_dtype))
    b_pad = jnp.zeros((1, n_cls_pad), dtype=jnp.float32)
    b_pad = b_pad.at[0, :n_cls].set(bias.astype(jnp.float32))
    return w_t_pad, b_pad


def _vmem_limit_bytes():
    """Per-generation scoped-VMEM limit: half of physical VMEM, capped at 96 MiB.

    v5e/v6e (128 MiB physical) -> 64 MiB; v7x (64 MiB per-TC) -> 32 MiB.
    Falls back to the v7x-safe 32 MiB if the hardware query is unavailable.
    """
    phys = None
    try:
        info = pltpu.get_tpu_info()
        phys = getattr(info, "vmem_capacity_bytes", None)
    except Exception:
        phys = None
    if not phys:
        phys = 64 * 1024 * 1024
    return int(min(phys // 2, 96 * 1024 * 1024))


def _choose_tm(m_rows, d_model, n_cls_pad, x_itemsize, w_itemsize,
               vmem_limit_bytes):
    """Largest M-tile whose double-buffered x/out tiles fit the remaining VMEM.

    The resident (single-buffered) weight + f32 bias and a fixed compiler
    scratch headroom are subtracted from the scoped limit first.
    """
    # Real sublane multiple for the activation dtype: 8 f32 / 16 bf16 / 32 int8.
    sub = max(8, 32 // max(x_itemsize, 1))

    resident = d_model * n_cls_pad * w_itemsize + n_cls_pad * 4   # weight + f32 bias
    headroom = 4 * 1024 * 1024                                    # compiler scratch
    budget = vmem_limit_bytes - resident - headroom
    budget = max(budget, 2 * 1024 * 1024)

    # Double-buffered x tile + double-buffered out tile (both activation dtype).
    per_row = 2 * (d_model + n_cls_pad) * x_itemsize
    tm = budget // max(per_row, 1)

    # Keep at least ~2 grid tiles for medium/large M so v7x's two TensorCores
    # (each with its own HBM path) both get work via the "parallel" grid axis.
    if m_rows >= 512:
        tm = min(tm, _round_up(pl.cdiv(m_rows, 2), sub))

    tm = min(tm, 4096)                           # diminishing returns past this
    tm = min(tm, _round_up(m_rows, sub))         # don't exceed the problem

    # MXU / sublane-friendly alignment.
    if tm >= 256:
        tm = _round_down(tm, 256)
    else:
        tm = max(sub, _round_down(tm, sub))
    return int(tm)


@functools.partial(jax.jit, static_argnames=("n_cls",))
def classification_head_forward(x, w_t_pad, b_pad, n_cls):
    """Forward pass: x (..., d_model) -> (..., n_cls) using prepared params."""
    *lead, d_model = x.shape
    n_cls_pad = w_t_pad.shape[1]
    m = 1
    for s in lead:
        m *= s

    x2d = x.reshape(m, d_model)

    x_itemsize = jnp.dtype(x.dtype).itemsize
    w_itemsize = jnp.dtype(w_t_pad.dtype).itemsize
    vmem_limit = _vmem_limit_bytes()
    tm = _choose_tm(m, d_model, n_cls_pad, x_itemsize, w_itemsize, vmem_limit)

    grid = (pl.cdiv(m, tm),)   # ragged final tile handled by Pallas (masked store)

    cost = pl.CostEstimate(
        flops=2 * m * d_model * n_cls_pad,
        transcendentals=0,
        bytes_accessed=int(m * d_model * x_itemsize
                           + d_model * n_cls_pad * w_itemsize
                           + n_cls_pad * 4
                           + m * n_cls_pad * x_itemsize),
    )

    out2d = pl.pallas_call(
        _linear_kernel,
        out_shape=jax.ShapeDtypeStruct((m, n_cls_pad), x.dtype),
        grid_spec=pl.GridSpec(
            grid=grid,
            in_specs=[
                # x tile marches along M (double-buffered by default).
                pl.BlockSpec((tm, d_model), lambda i: (i, 0)),
                # Weight/bias are grid-invariant: single-buffer them so the
                # saved VMEM goes into a larger TM tile instead.
                pl.BlockSpec((d_model, n_cls_pad), lambda i: (0, 0),
                             pipeline_mode=pl.Buffered(1)),
                pl.BlockSpec((1, n_cls_pad), lambda i: (0, 0),
                             pipeline_mode=pl.Buffered(1)),
            ],
            out_specs=pl.BlockSpec((tm, n_cls_pad), lambda i: (i, 0)),
        ),
        compiler_params=pltpu.CompilerParams(
            dimension_semantics=("parallel",),   # independent M tiles
            vmem_limit_bytes=vmem_limit,         # per-generation scoped limit
        ),
        cost_estimate=cost,
    )(x2d, w_t_pad, b_pad)

    if n_cls_pad != n_cls:
        out2d = out2d[:, :n_cls]
    return out2d.reshape(*lead, n_cls)


def classification_head(x, weight, bias):
    """Convenience one-shot wrapper (prep + forward). Prefer preparing params
    once and calling classification_head_forward in real training loops."""
    n_cls = weight.shape[0]
    w_t_pad, b_pad = prepare_classification_head_params(
        weight, bias, param_dtype=x.dtype)
    return classification_head_forward(x, w_t_pad, b_pad, n_cls)


if __name__ == "__main__":
    key = jax.random.PRNGKey(0)
    kx, kw, kb, kx2 = jax.random.split(key, 4)

    # Small shapes consistent with the module: tokens of width d_model.
    B, N, d_model, n_cls = 2, 8, 32, 16

    x = jax.random.normal(kx, (B, N, d_model), dtype=jnp.float32)
    # Deterministic param init (mimicking nn.Linear's uniform(-1/sqrt(d), 1/sqrt(d)))
    bound = 1.0 / (d_model ** 0.5)
    weight = jax.random.uniform(kw, (n_cls, d_model), minval=-bound,
                                maxval=bound, dtype=jnp.float32)
    bias = jax.random.uniform(kb, (n_cls,), minval=-bound, maxval=bound,
                              dtype=jnp.float32)

    # Hoisted, one-time param prep (transpose + lane padding + f32 bias).
    w_t_pad, b_pad = prepare_classification_head_params(
        weight, bias, param_dtype=x.dtype)

    # Case 1: regular shape.
    out = classification_head_forward(x, w_t_pad, b_pad, n_cls)
    out = jax.block_until_ready(out)
    ref = x @ weight.T + bias
    assert out.shape == (B, N, n_cls)
    assert jnp.allclose(out, ref, atol=1e-5, rtol=1e-5)

    # Case 2: ragged token count (exercises the masked final-tile path).
    x2 = jax.random.normal(kx2, (3, 7, d_model), dtype=jnp.float32)
    out2 = classification_head_forward(x2, w_t_pad, b_pad, n_cls)
    out2 = jax.block_until_ready(out2)
    ref2 = x2 @ weight.T + bias
    assert out2.shape == (3, 7, n_cls)
    assert jnp.allclose(out2, ref2, atol=1e-5, rtol=1e-5)

    print("KERNEL_OK")
</pallas_src>

<mosaic_0001>
module attributes {stable_mosaic.version = 11 : i64} {
  func.func @_linear_kernel(%arg0: i32, %arg1: memref<16x32xf32, #tpu.memory_space<vmem>>, %arg2: memref<32x128xf32, #tpu.memory_space<vmem>>, %arg3: memref<1x128xf32, #tpu.memory_space<vmem>>, %arg4: memref<16x128xf32, #tpu.memory_space<vmem>>) attributes {dimension_semantics = [#tpu.dimension_semantics<parallel>], iteration_bounds = array<i64: 1>, scalar_prefetch = 0 : i64, scratch_operands = 0 : i64, tpu.core_type = #tpu.core_type<tc>, window_params = [{transform_indices = @transform_0, window_bounds = array<i64: 16, 32>}, {pipeline_mode = #tpu.pipeline_mode<synchronous>, transform_indices = @transform_1, window_bounds = array<i64: 32, 128>}, {pipeline_mode = #tpu.pipeline_mode<synchronous>, transform_indices = @transform_2, window_bounds = array<i64: 1, 128>}, {transform_indices = @transform_3, window_bounds = array<i64: 16, 128>}]} {
    %c0 = arith.constant 0 : index
    %c0_0 = arith.constant 0 : index
    %0 = vector.load %arg1[%c0, %c0_0] : memref<16x32xf32, #tpu.memory_space<vmem>>, vector<16x32xf32>
    %c0_1 = arith.constant 0 : index
    %c0_2 = arith.constant 0 : index
    %1 = vector.load %arg2[%c0_1, %c0_2] : memref<32x128xf32, #tpu.memory_space<vmem>>, vector<32x128xf32>
    %cst = arith.constant dense<0.000000e+00> : vector<16x128xf32>
    %2 = tpu.matmul %0, %1, %cst {dimension_numbers = #tpu.dot_dimension_numbers<[1], [0], [0], [1], [0, 0, 1, 1], [], []>} : vector<16x32xf32>, vector<32x128xf32>, vector<16x128xf32> -> vector<16x128xf32>
    %c0_3 = arith.constant 0 : index
    %c0_4 = arith.constant 0 : index
    %3 = vector.load %arg3[%c0_3, %c0_4] : memref<1x128xf32, #tpu.memory_space<vmem>>, vector<1x128xf32>
    %4 = vector.broadcast %3 : vector<1x128xf32> to vector<16x128xf32>
    %5 = arith.addf %2, %4 : vector<16x128xf32>
    %c0_5 = arith.constant 0 : index
    %c0_6 = arith.constant 0 : index
    %6 = vector.load %arg4[%c0_5, %c0_6] : memref<16x128xf32, #tpu.memory_space<vmem>>, vector<16x128xf32>
    tpu.vector_store %arg4[%c0_5, %c0_6], %5 {strides = array<i32>} : memref<16x128xf32, #tpu.memory_space<vmem>>, vector<16x128xf32>,
    return
  }
  func.func @transform_0(%arg0: i32) -> (i32, i32) {
    %c0_i32 = arith.constant 0 : i32
    %c0_i32_0 = arith.constant 0 : i32
    return %arg0, %c0_i32 : i32, i32
  }
  func.func @transform_1(%arg0: i32) -> (i32, i32) {
    %c0_i32 = arith.constant 0 : i32
    %c0_i32_0 = arith.constant 0 : i32
    %c0_i32_1 = arith.constant 0 : i32
    return %c0_i32, %c0_i32_0 : i32, i32
  }
  func.func @transform_2(%arg0: i32) -> (i32, i32) {
    %c0_i32 = arith.constant 0 : i32
    %c0_i32_0 = arith.constant 0 : i32
    %c0_i32_1 = arith.constant 0 : i32
    return %c0_i32, %c0_i32_0 : i32, i32
  }
  func.func @transform_3(%arg0: i32) -> (i32, i32) {
    %c0_i32 = arith.constant 0 : i32
    %c0_i32_0 = arith.constant 0 : i32
    return %arg0, %c0_i32 : i32, i32
  }
}

</mosaic_0001>

<bundles_post_ra>
// kernel: classification_head_forward.1
= control target key start
LH: loop header
LB: loop body
LE: loop exit
PB: predicated region body
PF: predicated region fallthrough
CT: control target
= control target key end

     0   :  { %8 = vsyncpa [#allocation3], 0  ;;  %s196_s0 = inlined_call_operand.hbm [shape: f32[16,32], index: 0, kind: input, shape index: {}]   ;;  %s197_s1 = inlined_call_operand.hbm [shape: f32[32,128], index: 1, kind: input, shape index: {}]   ;;  %s198_s2 = inlined_call_operand.vmem [shape: f32[1,128], index: 2, kind: input, shape index: {}]   ;;  %s199_s3 = inlined_call_operand.vmem [shape: f32[16,128], index: 3, kind: output, shape index: {}]  }
   0x1   :  { %s14_s14 = sshll.u32 %s196_s0, 4  ;;  %s15_s14 = int_to_ptr.hbm [resolvable:$true] %s14_s14 }
   0x2   :  { %9 = vsyncpa [#allocation5], 0  ;;  %s157_s15 = smov [#allocation2]   ;;  %s27_s19 = sshll.u32 %s197_s1, 4  ;;  %s28_s19 = int_to_ptr.hbm [resolvable:$true] %s27_s19 }
   0x3   :  { %s16_s16 = sshll.u32 %s157_s15, 4  ;;  %s158_s20 = smov 128   ;;  %s17_s16 = int_to_ptr.vmem [resolvable:$true] %s16_s16 }
   0x4   :  { %s159_s21 = smov 8   ;;  %s160_s22 = smov [#allocation4]  }
   0x5   :  { %22 = dma.hbm_to_vmem [thread:$0]  %s15_s14, 256, %s17_s16, [#allocation3], %s158_s20, %s158_s20, %s159_s21  }
   0x6   :  { %s29_s23 = sshll.u32 %s160_s22, 4  ;;  %s30_s23 = int_to_ptr.vmem [resolvable:$true] %s29_s23 }
   0x7   :  { %35 = dma.hbm_to_vmem [thread:$0]  %s28_s19, 512, %s30_s23, [#allocation5], %s158_s20, %s158_s20, %s159_s21  }
   0x8   :  { %153 = dma.done.wait [#allocation3], 256  }
   0x9   :  { %154 = vsyncadd [#allocation3], 4294967040 }
   0xa   :  { %155 = dma.done.wait [#allocation5], 512  }
   0xb   :  { %156 = vsyncadd [#allocation5], 4294966784  ;;  %v51_v0 = vld [vmem:[#allocation4 + $0x18] sm:$0xff]  ;;  %v50_v1 = vld [vmem:[#allocation4 + $0x10] sm:$0xff]  ;;  %vm56_vm0 = vcmask 261120  }
   0xc   :  { %75 = vmatpush.msra.mxu0 %v51_v0  ;;  %96 = vmatpush.msra.mxu1 %v51_v0  ;;  %v49_v2 = vld [vmem:[#allocation4 + $0x8] sm:$0xff]  ;;  %v48_v3 = vld [vmem:[#allocation4] sm:$0xff]  ;;  %v46_v4 = vld [vmem:[#allocation2] sm:$0xff] }
   0xd   :  { %v47_v5 = vld [vmem:[#allocation2 + $0x8] sm:$0xff]  ;;  %v104_v6 = vld [vmem:[%s198_s2] ss:$0 sm:$0xff] }
   0xe   :  { %76 = vmatpush.msra.mxu0 %v50_v1  ;;  %97 = vmatpush.msra.mxu1 %v50_v1 }
  0x10   :  { %77 = vmatpush.msra.mxu0 %v49_v2  ;;  %98 = vmatpush.msra.mxu1 %v49_v2 }
  0x12   :  { %78 = vmatpush.msra.mxu0 %v48_v3  ;;  %99 = vmatpush.msra.mxu1 %v48_v3 }
  0x13   :  { %94 = vmatmul.msk.f32.vlgmr.msra.gmra.mxu0 %vm56_vm0, %v46_v4  ;;  %95 = vmatmul.msk.f32.vlgmr.msra.gmra.mxu1 %vm56_vm0, %v47_v5 }
  0x90   :  { %v80_v7 = vpop.f32.mrf.mxu0  ;;  %v83_v8 = vpop.f32.mrf.mxu1 }
  0x91   :  { %v81_v9 = vadd.f32 %v104_v6, %v80_v7  ;;  %v84_v10 = vadd.f32 %v104_v6, %v83_v8 }
  0x93   :  { %86 = vst [vmem:[%s199_s3] sm:$0xff] %v81_v9 }
  0x94   :  { %87 = vst [vmem:[%s199_s3 + $0x8] sm:$0xff] %v84_v10 }
  0x95   :  { %92 = vsyncpa [#allocation3], 1 }
  0x96   :  { %93 = vsyncpa [#allocation5], 1 }

</bundles_post_ra>
